<compile_context>
chip_gen: v6e
topology: v6e:2x2x1
jax: 0.10.0
libtpu: 0.0.40
codegen_flags: <defaults>
</compile_context>

<pallas_src>
import functools
import math

import jax
import jax.numpy as jnp
from jax.experimental import pallas as pl
from jax.experimental.pallas import tpu as pltpu

EPS = 1e-5


# ----------------------------- fused kernel ---------------------------------

def _fused_kernel(h, cin, c1, c2, ncls,
                  x_ref, w1_ref, w2_ref, vec_ref, lt_ref, p_ref, o_ref):
    """One block of samples per grid step; batch*H packed on the lane axis."""
    L = x_ref.shape[1]                        # = bblk * h, multiple of 128

    vec = vec_ref[...]                        # (maxc, 5) packed per-channel vectors
    s0 = vec[:cin, 0:1]                       # input-BN scale
    t0 = vec[:cin, 1:2]                       # input-BN shift
    b1 = vec[:c1, 2:3]                        # conv1 folded-BN bias
    b2 = vec[:c2, 3:4]                        # conv2 folded-BN bias
    bl = vec[:ncls, 4:5]                      # linear bias

    # -- layer 0: eval-mode input BatchNorm (pure VPU FMA) --------------------
    y0 = x_ref[...] * s0 + t0                 # (cin, L)

    # conv taps via lane rotation + per-sample boundary masks (== zero padding)
    pos0 = jax.lax.broadcasted_iota(jnp.int32, (cin, L), 1) % h
    prev0 = jnp.where(pos0 == 0, 0.0, pltpu.roll(y0, shift=1, axis=1))
    next0 = jnp.where(pos0 == h - 1, 0.0, pltpu.roll(y0, shift=L - 1, axis=1))

    # -- layer 1: conv(k=3,s=1,p=1) + BN(folded) + ReLU: 3 small MXU matmuls --
    w1 = w1_ref[...]                          # (3, c1, cin); tap k multiplies x[j+k-1]
    a1 = (jnp.dot(w1[0], prev0, preferred_element_type=jnp.float32)
          + jnp.dot(w1[1], y0, preferred_element_type=jnp.float32)
          + jnp.dot(w1[2], next0, preferred_element_type=jnp.float32))
    y1 = jnp.maximum(a1 + b1, 0.0)            # (c1, L)

    pos1 = jax.lax.broadcasted_iota(jnp.int32, (c1, L), 1) % h
    prev1 = jnp.where(pos1 == 0, 0.0, pltpu.roll(y1, shift=1, axis=1))
    next1 = jnp.where(pos1 == h - 1, 0.0, pltpu.roll(y1, shift=L - 1, axis=1))

    # -- layer 2: conv(k=3,s=2,p=1) + BN(folded) + ReLU ------------------------
    # Computed densely at stride 1; the stride-2 selection + average pool are
    # applied by the P matmul below (selection commutes with bias+ReLU).
    w2 = w2_ref[...]                          # (3, c2, c1)
    a2 = (jnp.dot(w2[0], prev1, preferred_element_type=jnp.float32)
          + jnp.dot(w2[1], y1, preferred_element_type=jnp.float32)
          + jnp.dot(w2[2], next1, preferred_element_type=jnp.float32))
    z2 = jnp.maximum(a2 + b2, 0.0)            # (c2, L)

    # -- layers 3+4: linear head first (ncls x c2 is tiny), then stride-2
    #    selection + per-sample average pool as one matmul against P(L, bblk) --
    t = jnp.dot(lt_ref[...], z2, preferred_element_type=jnp.float32)      # (ncls, L)
    o_ref[...] = jnp.dot(t, p_ref[...], preferred_element_type=jnp.float32) + bl


# ------------------------------ wrapper --------------------------------------

def _bn_fold(bn):
    scale = bn["gamma"].reshape(-1) * jax.lax.rsqrt(bn["var"].reshape(-1) + EPS)
    shift = bn["beta"].reshape(-1) - bn["mean"].reshape(-1) * scale
    return scale.astype(jnp.float32), shift.astype(jnp.float32)


def _choose_block(n, h):
    """Samples per grid step; bblk*h is always a multiple of 128 (lane-dense)."""
    step = 128 // math.gcd(h, 128)            # bblk multiple of step => bblk*h % 128 == 0
    n_up = -(-n // step) * step
    if n_up * h <= 4096:
        return n_up                           # small batch: one lane-dense block
    unit = step * 128 // math.gcd(step, 128)  # lcm(step, 128): lane-dense output blocks too
    target = max(unit, 2048 // h)
    return -(-target // unit) * unit


def fused_forward(x, params):
    # x: (N, Cin, H) float32
    n, cin, h = x.shape
    c1 = params["conv1_w"].shape[0]
    c2 = params["conv2_w"].shape[0]
    ncls = params["lin_w"].shape[1]
    stride2 = 2
    h_out2 = (h - 1) // stride2 + 1

    bblk = _choose_block(n, h)
    L = bblk * h
    npad = -(-n // bblk) * bblk
    nblocks = npad // bblk

    # ---- fold BN into conv weights / biases (eval-mode semantics) ------------
    s0, t0 = _bn_fold(params["bn0"])
    s1, t1 = _bn_fold(params["bn1"])
    s2, t2 = _bn_fold(params["bn2"])
    w1f = params["conv1_w"].astype(jnp.float32) * s1[:, None, None]   # (c1, cin, 3)
    w2f = params["conv2_w"].astype(jnp.float32) * s2[:, None, None]   # (c2, c1, 3)
    w1pack = jnp.transpose(w1f, (2, 0, 1))    # (3, c1, cin)
    w2pack = jnp.transpose(w2f, (2, 0, 1))    # (3, c2, c1)

    # ---- consolidate all per-channel vectors into one packed (maxc, 5) array -
    maxc = max(cin, c1, c2, ncls)
    vec = jnp.zeros((maxc, 5), jnp.float32)
    vec = vec.at[:cin, 0].set(s0)
    vec = vec.at[:cin, 1].set(t0)
    vec = vec.at[:c1, 2].set(t1)
    vec = vec.at[:c2, 3].set(t2)
    vec = vec.at[:ncls, 4].set(params["lin_b"].reshape(-1).astype(jnp.float32))

    lin_t = params["lin_w"].astype(jnp.float32).T                     # (ncls, c2)

    # ---- stride-2 selection + AdaptiveAvgPool((1,1)) as a constant matrix ----
    lanes = jnp.arange(L)
    sel = ((lanes % h) % stride2 == 0).astype(jnp.float32) / h_out2
    pool_p = (lanes[:, None] // h == jnp.arange(bblk)[None, :]).astype(jnp.float32)
    pool_p = pool_p * sel[:, None]                                    # (L, bblk)

    # ---- pack batch*H onto lanes: (npad, cin, h) -> (cin, npad*h) -------------
    xpad = jnp.pad(x.astype(jnp.float32), ((0, npad - n), (0, 0), (0, 0)))
    x2d = jnp.transpose(xpad, (1, 0, 2)).reshape(cin, npad * h)

    flops = (npad * h * (6 * cin * c1 + 6 * c1 * c2 + 2 * c2 * ncls)
             + nblocks * 2 * ncls * L * bblk)
    bytes_accessed = (x2d.size + npad * ncls + w1pack.size + w2pack.size
                      + vec.size + lin_t.size + pool_p.size) * 4

    grid_spec = pltpu.PrefetchScalarGridSpec(
        num_scalar_prefetch=0,
        grid=(nblocks,),
        in_specs=[
            pl.BlockSpec((cin, L), lambda i: (0, i)),          # packed input slab
            pl.BlockSpec((3, c1, cin), lambda i: (0, 0, 0)),   # conv1 taps (BN folded)
            pl.BlockSpec((3, c2, c1), lambda i: (0, 0, 0)),    # conv2 taps (BN folded)
            pl.BlockSpec((maxc, 5), lambda i: (0, 0)),         # packed scales/shifts/biases
            pl.BlockSpec((ncls, c2), lambda i: (0, 0)),        # linear weight (transposed)
            pl.BlockSpec((L, bblk), lambda i: (0, 0)),         # stride-2 + avg-pool matrix
        ],
        out_specs=pl.BlockSpec((ncls, bblk), lambda i: (0, i)),
    )

    out = pl.pallas_call(
        functools.partial(_fused_kernel, h, cin, c1, c2, ncls),
        out_shape=jax.ShapeDtypeStruct((ncls, npad), jnp.float32),
        grid_spec=grid_spec,
        compiler_params=pltpu.CompilerParams(
            dimension_semantics=("parallel",)),                # batch blocks shard across TCs
        cost_estimate=pl.CostEstimate(
            flops=int(flops), transcendentals=0,
            bytes_accessed=int(bytes_accessed)),
    )(x2d, w1pack, w2pack, vec, lin_t, pool_p)

    return out[:, :n].T                                        # (n, ncls)


@jax.jit
def forward(x_nchw, params):
    # x_nchw: (N, variables, input_features, 1)  -- PyTorch NCHW with W=1
    x = x_nchw[..., 0].astype(jnp.float32)                     # (N, C, H)
    return fused_forward(x, params)


# --------------------- pure-JAX reference (original structure) ----------------

def reference_forward(x_nchw, params):
    x = x_nchw[..., 0].astype(jnp.float32)

    def bn(v, p):
        scale = p["gamma"].reshape(1, -1, 1) * jax.lax.rsqrt(p["var"].reshape(1, -1, 1) + EPS)
        shift = p["beta"].reshape(1, -1, 1) - p["mean"].reshape(1, -1, 1) * scale
        return v * scale + shift

    def conv1d(v, w, stride):
        _, _, h = v.shape
        vp = jnp.pad(v, ((0, 0), (0, 0), (1, 1)))
        h_out = (h - 1) // stride + 1
        cols = [vp[:, :, k:k + stride * (h_out - 1) + 1:stride] for k in range(3)]
        stk = jnp.stack(cols, axis=-1)                          # (n, cin, h_out, 3)
        return jnp.einsum('ncht,oct->noh', stk, w)

    x = bn(x, params["bn0"])
    x = jax.nn.relu(bn(conv1d(x, params["conv1_w"], 1), params["bn1"]))
    x = jax.nn.relu(bn(conv1d(x, params["conv2_w"], 2), params["bn2"]))
    pooled = jnp.mean(x, axis=-1)
    return pooled @ params["lin_w"] + params["lin_b"]


# ---------------- Parameter init (deterministic, synthetic) ------------------

def make_bn(key, c):
    k1, k2, k3, k4 = jax.random.split(key, 4)
    return dict(
        gamma=1.0 + 0.1 * jax.random.normal(k1, (1, c), jnp.float32),
        beta=0.05 * jax.random.normal(k2, (1, c), jnp.float32),
        mean=0.1 * jax.random.normal(k3, (1, c), jnp.float32),
        var=1.0 + 0.1 * jnp.abs(jax.random.normal(k4, (1, c), jnp.float32)),
    )


def init_params(key, variables, num_classes):
    c1, c2 = 8, 16
    ks = jax.random.split(key, 7)
    return dict(
        bn0=make_bn(ks[0], variables),
        conv1_w=0.1 * jax.random.normal(ks[1], (c1, variables, 3), jnp.float32),
        bn1=make_bn(ks[2], c1),
        conv2_w=0.1 * jax.random.normal(ks[3], (c2, c1, 3), jnp.float32),
        bn2=make_bn(ks[4], c2),
        lin_w=0.1 * jax.random.normal(ks[5], (c2, num_classes), jnp.float32),
        lin_b=0.01 * jax.random.normal(ks[6], (1, num_classes), jnp.float32),
    )


if __name__ == "__main__":
    # TODO(synk): YAML model-spec file I/O / dynamic layer construction is host-side
    # config handling and is not reproduced here; the resulting layer stack is.
    N, VARIABLES, INPUT_FEATURES, NUM_CLASSES = 2, 4, 16, 2
    x = jax.random.normal(jax.random.PRNGKey(0),
                          (N, VARIABLES, INPUT_FEATURES, 1), jnp.float32)
    params = init_params(jax.random.PRNGKey(42), VARIABLES, NUM_CLASSES)

    y = forward(x, params)
    jax.block_until_ready(y)
    assert y.shape == (N, NUM_CLASSES)

    y_ref = reference_forward(x, params)
    assert jnp.allclose(y, y_ref, rtol=1e-3, atol=1e-3), (y, y_ref)

    print("KERNEL_OK")
</pallas_src>

<mosaic_0001>
module attributes {stable_mosaic.version = 11 : i64} {
  func.func @_fused_kernel(%arg0: i32, %arg1: memref<4x128xf32, #tpu.memory_space<vmem>>, %arg2: memref<3x8x4xf32, #tpu.memory_space<vmem>>, %arg3: memref<3x16x8xf32, #tpu.memory_space<vmem>>, %arg4: memref<16x5xf32, #tpu.memory_space<vmem>>, %arg5: memref<2x16xf32, #tpu.memory_space<vmem>>, %arg6: memref<128x8xf32, #tpu.memory_space<vmem>>, %arg7: memref<2x8xf32, #tpu.memory_space<vmem>>) attributes {dimension_semantics = [#tpu.dimension_semantics<parallel>], iteration_bounds = array<i64: 1>, scalar_prefetch = 0 : i64, scratch_operands = 0 : i64, tpu.core_type = #tpu.core_type<tc>, window_params = [{transform_indices = @transform_0, window_bounds = array<i64: 4, 128>}, {pipeline_mode = #tpu.pipeline_mode<synchronous>, transform_indices = @transform_1, window_bounds = array<i64: 3, 8, 4>}, {pipeline_mode = #tpu.pipeline_mode<synchronous>, transform_indices = @transform_2, window_bounds = array<i64: 3, 16, 8>}, {pipeline_mode = #tpu.pipeline_mode<synchronous>, transform_indices = @transform_3, window_bounds = array<i64: 16, 5>}, {pipeline_mode = #tpu.pipeline_mode<synchronous>, transform_indices = @transform_4, window_bounds = array<i64: 2, 16>}, {pipeline_mode = #tpu.pipeline_mode<synchronous>, transform_indices = @transform_5, window_bounds = array<i64: 128, 8>}, {transform_indices = @transform_6, window_bounds = array<i64: 2, 8>}]} {
    %c0 = arith.constant 0 : index
    %c0_0 = arith.constant 0 : index
    %0 = vector.load %arg4[%c0, %c0_0] : memref<16x5xf32, #tpu.memory_space<vmem>>, vector<16x5xf32>
    %1 = vector.extract_strided_slice %0 {offsets = [0, 0], sizes = [4, 1], strides = [1, 1]} : vector<16x5xf32> to vector<4x1xf32>
    %2 = vector.extract_strided_slice %0 {offsets = [0, 1], sizes = [4, 1], strides = [1, 1]} : vector<16x5xf32> to vector<4x1xf32>
    %3 = vector.extract_strided_slice %0 {offsets = [0, 2], sizes = [8, 1], strides = [1, 1]} : vector<16x5xf32> to vector<8x1xf32>
    %4 = vector.extract_strided_slice %0 {offsets = [0, 3], sizes = [16, 1], strides = [1, 1]} : vector<16x5xf32> to vector<16x1xf32>
    %5 = vector.extract_strided_slice %0 {offsets = [0, 4], sizes = [2, 1], strides = [1, 1]} : vector<16x5xf32> to vector<2x1xf32>
    %c0_1 = arith.constant 0 : index
    %c0_2 = arith.constant 0 : index
    %6 = vector.load %arg1[%c0_1, %c0_2] : memref<4x128xf32, #tpu.memory_space<vmem>>, vector<4x128xf32>
    %7 = vector.broadcast %1 : vector<4x1xf32> to vector<4x128xf32>
    %8 = arith.mulf %6, %7 : vector<4x128xf32>
    %9 = vector.broadcast %2 : vector<4x1xf32> to vector<4x128xf32>
    %10 = arith.addf %8, %9 : vector<4x128xf32>
    %11 = tpu.iota {dimensions = array<i32: 1>} : vector<4x128xi32>
    %c16_i32 = arith.constant 16 : i32
    %c0_i32 = arith.constant 0 : i32
    %12 = arith.cmpi eq, %c16_i32, %c0_i32 : i32
    %c1_i32 = arith.constant 1 : i32
    %13 = arith.select %12, %c1_i32, %c16_i32 : i32
    %14 = vector.broadcast %13 : i32 to vector<4x128xi32>
    %15 = arith.remsi %11, %14 : vector<4x128xi32>
    %c0_i32_3 = arith.constant 0 : i32
    %16 = vector.broadcast %c0_i32_3 : i32 to vector<4x128xi32>
    %17 = arith.cmpi ne, %15, %16 : vector<4x128xi32>
    %c0_i32_4 = arith.constant 0 : i32
    %18 = vector.broadcast %c0_i32_4 : i32 to vector<4x128xi32>
    %19 = arith.cmpi slt, %15, %18 : vector<4x128xi32>
    %c0_i32_5 = arith.constant 0 : i32
    %20 = arith.cmpi slt, %13, %c0_i32_5 : i32
    %21 = vector.broadcast %20 : i1 to vector<4x128xi1>
    %22 = vector.broadcast %21 : vector<4x128xi1> to vector<4x128xi1>
    %23 = arith.xori %19, %22 : vector<4x128xi1>
    %24 = arith.andi %23, %17 : vector<4x128xi1>
    %25 = vector.broadcast %13 : i32 to vector<4x128xi32>
    %26 = arith.addi %15, %25 : vector<4x128xi32>
    %27 = arith.select %24, %26, %15 : vector<4x128xi1>, vector<4x128xi32>
    %c0_i32_6 = arith.constant 0 : i32
    %28 = vector.broadcast %c0_i32_6 : i32 to vector<4x128xi32>
    %29 = arith.cmpi eq, %27, %28 : vector<4x128xi32>
    %c1_i32_7 = arith.constant 1 : i32
    %30 = tpu.dynamic_rotate %10 by %c1_i32_7 dim 1 : vector<4x128xf32>, i32 -> vector<4x128xf32>
    %cst = arith.constant 0.000000e+00 : f32
    %31 = vector.broadcast %cst : f32 to vector<4x128xf32>
    %32 = arith.select %29, %31, %30 : vector<4x128xi1>, vector<4x128xf32>
    %c15_i32 = arith.constant 15 : i32
    %33 = vector.broadcast %c15_i32 : i32 to vector<4x128xi32>
    %34 = arith.cmpi eq, %27, %33 : vector<4x128xi32>
    %c127_i32 = arith.constant 127 : i32
    %35 = tpu.dynamic_rotate %10 by %c127_i32 dim 1 : vector<4x128xf32>, i32 -> vector<4x128xf32>
    %cst_8 = arith.constant 0.000000e+00 : f32
    %36 = vector.broadcast %cst_8 : f32 to vector<4x128xf32>
    %37 = arith.select %34, %36, %35 : vector<4x128xi1>, vector<4x128xf32>
    %c0_9 = arith.constant 0 : index
    %c0_10 = arith.constant 0 : index
    %c0_11 = arith.constant 0 : index
    %38 = vector.load %arg2[%c0_9, %c0_10, %c0_11] : memref<3x8x4xf32, #tpu.memory_space<vmem>>, vector<3x8x4xf32>
    %39 = vector.extract_strided_slice %38 {offsets = [0, 0, 0], sizes = [1, 8, 4], strides = [1, 1, 1]} : vector<3x8x4xf32> to vector<1x8x4xf32>
    %40 = vector.shape_cast %39 : vector<1x8x4xf32> to vector<8x4xf32>
    %cst_12 = arith.constant dense<0.000000e+00> : vector<8x128xf32>
    %41 = tpu.matmul %40, %32, %cst_12 {dimension_numbers = #tpu.dot_dimension_numbers<[1], [0], [0], [1], [0, 0, 1, 1], [], []>} : vector<8x4xf32>, vector<4x128xf32>, vector<8x128xf32> -> vector<8x128xf32>
    %42 = vector.extract_strided_slice %38 {offsets = [1, 0, 0], sizes = [1, 8, 4], strides = [1, 1, 1]} : vector<3x8x4xf32> to vector<1x8x4xf32>
    %43 = vector.shape_cast %42 : vector<1x8x4xf32> to vector<8x4xf32>
    %cst_13 = arith.constant dense<0.000000e+00> : vector<8x128xf32>
    %44 = tpu.matmul %43, %10, %cst_13 {dimension_numbers = #tpu.dot_dimension_numbers<[1], [0], [0], [1], [0, 0, 1, 1], [], []>} : vector<8x4xf32>, vector<4x128xf32>, vector<8x128xf32> -> vector<8x128xf32>
    %45 = arith.addf %41, %44 : vector<8x128xf32>
    %46 = vector.extract_strided_slice %38 {offsets = [2, 0, 0], sizes = [1, 8, 4], strides = [1, 1, 1]} : vector<3x8x4xf32> to vector<1x8x4xf32>
    %47 = vector.shape_cast %46 : vector<1x8x4xf32> to vector<8x4xf32>
    %cst_14 = arith.constant dense<0.000000e+00> : vector<8x128xf32>
    %48 = tpu.matmul %47, %37, %cst_14 {dimension_numbers = #tpu.dot_dimension_numbers<[1], [0], [0], [1], [0, 0, 1, 1], [], []>} : vector<8x4xf32>, vector<4x128xf32>, vector<8x128xf32> -> vector<8x128xf32>
    %49 = arith.addf %45, %48 : vector<8x128xf32>
    %50 = vector.broadcast %3 : vector<8x1xf32> to vector<8x128xf32>
    %51 = arith.addf %49, %50 : vector<8x128xf32>
    %cst_15 = arith.constant 0.000000e+00 : f32
    %52 = vector.broadcast %cst_15 : f32 to vector<8x128xf32>
    %53 = arith.maximumf %51, %52 : vector<8x128xf32>
    %54 = tpu.iota {dimensions = array<i32: 1>} : vector<8x128xi32>
    %c16_i32_16 = arith.constant 16 : i32
    %c0_i32_17 = arith.constant 0 : i32
    %55 = arith.cmpi eq, %c16_i32_16, %c0_i32_17 : i32
    %c1_i32_18 = arith.constant 1 : i32
    %56 = arith.select %55, %c1_i32_18, %c16_i32_16 : i32
    %57 = vector.broadcast %56 : i32 to vector<8x128xi32>
    %58 = arith.remsi %54, %57 : vector<8x128xi32>
    %c0_i32_19 = arith.constant 0 : i32
    %59 = vector.broadcast %c0_i32_19 : i32 to vector<8x128xi32>
    %60 = arith.cmpi ne, %58, %59 : vector<8x128xi32>
    %c0_i32_20 = arith.constant 0 : i32
    %61 = vector.broadcast %c0_i32_20 : i32 to vector<8x128xi32>
    %62 = arith.cmpi slt, %58, %61 : vector<8x128xi32>
    %c0_i32_21 = arith.constant 0 : i32
    %63 = arith.cmpi slt, %56, %c0_i32_21 : i32
    %64 = vector.broadcast %63 : i1 to vector<8x128xi1>
    %65 = vector.broadcast %64 : vector<8x128xi1> to vector<8x128xi1>
    %66 = arith.xori %62, %65 : vector<8x128xi1>
    %67 = arith.andi %66, %60 : vector<8x128xi1>
    %68 = vector.broadcast %56 : i32 to vector<8x128xi32>
    %69 = arith.addi %58, %68 : vector<8x128xi32>
    %70 = arith.select %67, %69, %58 : vector<8x128xi1>, vector<8x128xi32>
    %c0_i32_22 = arith.constant 0 : i32
    %71 = vector.broadcast %c0_i32_22 : i32 to vector<8x128xi32>
    %72 = arith.cmpi eq, %70, %71 : vector<8x128xi32>
    %c1_i32_23 = arith.constant 1 : i32
    %73 = tpu.dynamic_rotate %53 by %c1_i32_23 dim 1 : vector<8x128xf32>, i32 -> vector<8x128xf32>
    %cst_24 = arith.constant 0.000000e+00 : f32
    %74 = vector.broadcast %cst_24 : f32 to vector<8x128xf32>
    %75 = arith.select %72, %74, %73 : vector<8x128xi1>, vector<8x128xf32>
    %c15_i32_25 = arith.constant 15 : i32
    %76 = vector.broadcast %c15_i32_25 : i32 to vector<8x128xi32>
    %77 = arith.cmpi eq, %70, %76 : vector<8x128xi32>
    %c127_i32_26 = arith.constant 127 : i32
    %78 = tpu.dynamic_rotate %53 by %c127_i32_26 dim 1 : vector<8x128xf32>, i32 -> vector<8x128xf32>
    %cst_27 = arith.constant 0.000000e+00 : f32
    %79 = vector.broadcast %cst_27 : f32 to vector<8x128xf32>
    %80 = arith.select %77, %79, %78 : vector<8x128xi1>, vector<8x128xf32>
    %c0_28 = arith.constant 0 : index
    %c0_29 = arith.constant 0 : index
    %c0_30 = arith.constant 0 : index
    %81 = vector.load %arg3[%c0_28, %c0_29, %c0_30] : memref<3x16x8xf32, #tpu.memory_space<vmem>>, vector<3x16x8xf32>
    %82 = vector.extract_strided_slice %81 {offsets = [0, 0, 0], sizes = [1, 16, 8], strides = [1, 1, 1]} : vector<3x16x8xf32> to vector<1x16x8xf32>
    %83 = vector.shape_cast %82 : vector<1x16x8xf32> to vector<16x8xf32>
    %cst_31 = arith.constant dense<0.000000e+00> : vector<16x128xf32>
    %84 = tpu.matmul %83, %75, %cst_31 {dimension_numbers = #tpu.dot_dimension_numbers<[1], [0], [0], [1], [0, 0, 1, 1], [], []>} : vector<16x8xf32>, vector<8x128xf32>, vector<16x128xf32> -> vector<16x128xf32>
    %85 = vector.extract_strided_slice %81 {offsets = [1, 0, 0], sizes = [1, 16, 8], strides = [1, 1, 1]} : vector<3x16x8xf32> to vector<1x16x8xf32>
    %86 = vector.shape_cast %85 : vector<1x16x8xf32> to vector<16x8xf32>
    %cst_32 = arith.constant dense<0.000000e+00> : vector<16x128xf32>
    %87 = tpu.matmul %86, %53, %cst_32 {dimension_numbers = #tpu.dot_dimension_numbers<[1], [0], [0], [1], [0, 0, 1, 1], [], []>} : vector<16x8xf32>, vector<8x128xf32>, vector<16x128xf32> -> vector<16x128xf32>
    %88 = arith.addf %84, %87 : vector<16x128xf32>
    %89 = vector.extract_strided_slice %81 {offsets = [2, 0, 0], sizes = [1, 16, 8], strides = [1, 1, 1]} : vector<3x16x8xf32> to vector<1x16x8xf32>
    %90 = vector.shape_cast %89 : vector<1x16x8xf32> to vector<16x8xf32>
    %cst_33 = arith.constant dense<0.000000e+00> : vector<16x128xf32>
    %91 = tpu.matmul %90, %80, %cst_33 {dimension_numbers = #tpu.dot_dimension_numbers<[1], [0], [0], [1], [0, 0, 1, 1], [], []>} : vector<16x8xf32>, vector<8x128xf32>, vector<16x128xf32> -> vector<16x128xf32>
    %92 = arith.addf %88, %91 : vector<16x128xf32>
    %93 = vector.broadcast %4 : vector<16x1xf32> to vector<16x128xf32>
    %94 = arith.addf %92, %93 : vector<16x128xf32>
    %cst_34 = arith.constant 0.000000e+00 : f32
    %95 = vector.broadcast %cst_34 : f32 to vector<16x128xf32>
    %96 = arith.maximumf %94, %95 : vector<16x128xf32>
    %c0_35 = arith.constant 0 : index
    %c0_36 = arith.constant 0 : index
    %97 = vector.load %arg5[%c0_35, %c0_36] : memref<2x16xf32, #tpu.memory_space<vmem>>, vector<2x16xf32>
    %cst_37 = arith.constant dense<0.000000e+00> : vector<2x128xf32>
    %98 = tpu.matmul %97, %96, %cst_37 {dimension_numbers = #tpu.dot_dimension_numbers<[1], [0], [0], [1], [0, 0, 1, 1], [], []>} : vector<2x16xf32>, vector<16x128xf32>, vector<2x128xf32> -> vector<2x128xf32>
    %c0_38 = arith.constant 0 : index
    %c0_39 = arith.constant 0 : index
    %99 = vector.load %arg6[%c0_38, %c0_39] : memref<128x8xf32, #tpu.memory_space<vmem>>, vector<128x8xf32>
    %cst_40 = arith.constant dense<0.000000e+00> : vector<2x8xf32>
    %100 = tpu.matmul %98, %99, %cst_40 {dimension_numbers = #tpu.dot_dimension_numbers<[1], [0], [0], [1], [0, 0, 1, 1], [], []>} : vector<2x128xf32>, vector<128x8xf32>, vector<2x8xf32> -> vector<2x8xf32>
    %101 = vector.broadcast %5 : vector<2x1xf32> to vector<2x8xf32>
    %102 = arith.addf %100, %101 : vector<2x8xf32>
    %c0_41 = arith.constant 0 : index
    %c0_42 = arith.constant 0 : index
    %103 = vector.load %arg7[%c0_41, %c0_42] : memref<2x8xf32, #tpu.memory_space<vmem>>, vector<2x8xf32>
    tpu.vector_store %arg7[%c0_41, %c0_42], %102 {strides = array<i32>} : memref<2x8xf32, #tpu.memory_space<vmem>>, vector<2x8xf32>,
    return
  }
  func.func @transform_0(%arg0: i32) -> (i32, i32) {
    %c0_i32 = arith.constant 0 : i32
    %c0_i32_0 = arith.constant 0 : i32
    return %c0_i32, %arg0 : i32, i32
  }
  func.func @transform_1(%arg0: i32) -> (i32, i32, i32) {
    %c0_i32 = arith.constant 0 : i32
    %c0_i32_0 = arith.constant 0 : i32
    %c0_i32_1 = arith.constant 0 : i32
    %c0_i32_2 = arith.constant 0 : i32
    return %c0_i32, %c0_i32_0, %c0_i32_1 : i32, i32, i32
  }
  func.func @transform_2(%arg0: i32) -> (i32, i32, i32) {
    %c0_i32 = arith.constant 0 : i32
    %c0_i32_0 = arith.constant 0 : i32
    %c0_i32_1 = arith.constant 0 : i32
    %c0_i32_2 = arith.constant 0 : i32
    return %c0_i32, %c0_i32_0, %c0_i32_1 : i32, i32, i32
  }
  func.func @transform_3(%arg0: i32) -> (i32, i32) {
    %c0_i32 = arith.constant 0 : i32
    %c0_i32_0 = arith.constant 0 : i32
    %c0_i32_1 = arith.constant 0 : i32
    return %c0_i32, %c0_i32_0 : i32, i32
  }
  func.func @transform_4(%arg0: i32) -> (i32, i32) {
    %c0_i32 = arith.constant 0 : i32
    %c0_i32_0 = arith.constant 0 : i32
    %c0_i32_1 = arith.constant 0 : i32
    return %c0_i32, %c0_i32_0 : i32, i32
  }
  func.func @transform_5(%arg0: i32) -> (i32, i32) {
    %c0_i32 = arith.constant 0 : i32
    %c0_i32_0 = arith.constant 0 : i32
    %c0_i32_1 = arith.constant 0 : i32
    return %c0_i32, %c0_i32_0 : i32, i32
  }
  func.func @transform_6(%arg0: i32) -> (i32, i32) {
    %c0_i32 = arith.constant 0 : i32
    %c0_i32_0 = arith.constant 0 : i32
    return %c0_i32, %arg0 : i32, i32
  }
}

</mosaic_0001>

<bundles_post_ra>
// kernel: forward.1
= control target key start
LH: loop header
LB: loop body
LE: loop exit
PB: predicated region body
PF: predicated region fallthrough
CT: control target
= control target key end

     0   :  { %v881_v0 = vmov 0   ;;  %v882_v2 = vmov 0.0   ;;  %v883_v3 = vmov 1   ;;  %vm884_vm0 = vmmov 0   ;;  %s886_s27 = smov 1   ;;  %s1085_s3 = inlined_call_operand.vmem [shape: f32[16,5], index: 3, kind: input, shape index: {}]   ;;  %s1086_s0 = inlined_call_operand.vmem [shape: f32[4,128], index: 0, kind: input, shape index: {}]   ;;  %s1087_s1 = inlined_call_operand.vmem [shape: f32[3,8,4], index: 1, kind: input, shape index: {}]   ;;  %s1088_s2 = inlined_call_operand.vmem [shape: f32[3,16,8], index: 2, kind: input, shape index: {}]   ;;  %s1089_s5 = inlined_call_operand.vmem [shape: f32[128,8], index: 5, kind: input, shape index: {}]   ;;  %s1090_s4 = inlined_call_operand.vmem [shape: f32[2,16], index: 4, kind: input, shape index: {}]   ;;  %s1091_s6 = inlined_call_operand.vmem [shape: f32[2,8], index: 6, kind: output, shape index: {}]  }
   0x1   :  { %874 = vset.pattern.permute.xlu0 %v881_v0  ;;  %v928_v1 = vld [vmem:[%s1085_s3] sm:$0xff]  ;;  %793 = vmatprep.subr.mxu0 %v882_v2  ;;  %v885_v6 = vmov 2   ;;  %vm66_vm1 = vcmask 1043456   ;;  %v60_v10 = vld [vmem:[%s1087_s1 + $0x8] sm:$0xff]  ;;  %vm62_vm2 = vcmask 31744   ;;  %v37_v11 = vlaneseq  ;;  %v61_v20 = vld [vmem:[%s1087_s1 + $0x10] sm:$0xff] }
   0x2   :  { %28 = vperm.xlu0 %874, %v928_v1   ;;  %830 = vmatprep.subr.mxu1 %v882_v2  ;;  %v25_v5 = vld [vmem:[%s1086_s0] sm:$0xf]  ;;  %s887_s0 = smov 127   ;;  %vm311_vm5 = vcmask 64512   ;;  %v307_v24 = vld [vmem:[%s1088_s2 + $0x10] sm:$0xff]  ;;  %v888_v31 = vmov 3  }
   0x3   :  { %795 = vmatprep.mubr.msk.f32.mxu0 %vm884_vm0, %v882_v2  ;;  %862 = vmatprep.mubr.msk.f32.mxu1 %vm884_vm0, %v882_v2  ;;  %v38_v12 = vand.u32 127, %v37_v11  ;;  %v59_v16 = vld [vmem:[%s1087_s1] sm:$0xff]  ;;  %v308_v35 = vld [vmem:[%s1088_s2 + $0x18] sm:$0xff]  ;;  %v24_v37 = vld [vmem:[%s1085_s3 + $0x8] sm:$0xff]  ;;  %vm571_vm8 = vcmask 130048   ;;  %v889_v14 = vmov 4  }
   0x4   :  { %876 = vset.pattern.permute.xlu1 %v885_v6  ;;  %v305_v36 = vld [vmem:[%s1088_s2] sm:$0xff]  ;;  %v306_v39 = vld [vmem:[%s1088_s2 + $0x8] sm:$0xff]  ;;  %v660_v43 = vld [vmem:[%s1089_s5 + $0x78] sm:$0xff]  ;;  %vm735_vm9 = vcmask 58368  }
   0x5   :  { %v43_v13 = vand.u32 15, %v38_v12  ;;  %v309_v40 = vld [vmem:[%s1088_s2 + $0x20] sm:$0xff]  ;;  %v310_v42 = vld [vmem:[%s1088_s2 + $0x28] sm:$0xff]  ;;  %v659_v44 = vld [vmem:[%s1089_s5 + $0x70] sm:$0xff]  ;;  %831 = vmatpush3.msra.mxu1 %v660_v43 }
   0x6   :  { %875 = vset.pattern.permute.xlu0 %v883_v3  ;;  %832 = vmatprep.subr.mxu1 %v882_v2  ;;  %v658_v45 = vld [vmem:[%s1089_s5 + $0x68] sm:$0xff]  ;;  %v657_v46 = vld [vmem:[%s1089_s5 + $0x60] sm:$0xff]  ;;  %v656_v47 = vld [vmem:[%s1089_s5 + $0x58] sm:$0xff] }
   0x7   :  { %33 = vperm.xlu0 %875, %v928_v1   ;;  %vm952_vm3 = vcmp.eq.s32.totalorder %v43_v13, 0  ;;  %vm962_vm4 = vcmp.eq.s32.totalorder %v43_v13, 15  ;;  %833 = vmatpush3.msra.mxu1 %v659_v44  ;;  %v655_v48 = vld [vmem:[%s1089_s5 + $0x50] sm:$0xff]  ;;  %v654_v49 = vld [vmem:[%s1089_s5 + $0x48] sm:$0xff]  ;;  %v653_v50 = vld [vmem:[%s1089_s5 + $0x40] sm:$0xff] }
   0x8   :  { %vm749_vm6 = vmneg %vm952_vm3  ;;  %834 = vmatprep.subr.mxu1 %v882_v2  ;;  %v652_v51 = vld [vmem:[%s1089_s5 + $0x38] sm:$0xff]  ;;  %v651_v52 = vld [vmem:[%s1089_s5 + $0x30] sm:$0xff] }
   0x9   :  { %vm753_vm7 = vmneg %vm962_vm4  ;;  %835 = vmatpush3.msra.mxu1 %v658_v45  ;;  %v650_v53 = vld [vmem:[%s1089_s5 + $0x28] sm:$0xff]  ;;  %v649_v54 = vld [vmem:[%s1089_s5 + $0x20] sm:$0xff] }
   0xa   :  { %836 = vmatprep.subr.mxu1 %v882_v2  ;;  %v648_v55 = vld [vmem:[%s1089_s5 + $0x18] sm:$0xff]  ;;  %v647_v56 = vld [vmem:[%s1089_s5 + $0x10] sm:$0xff]  ;;  %v646_v57 = vld [vmem:[%s1089_s5 + $0x8] sm:$0xff] }
   0xb   :  { %877 = vset.pattern.permute.xlu0 %v888_v31  ;;  %837 = vmatpush3.msra.mxu1 %v657_v46  ;;  %v570_v12 = vld [vmem:[%s1090_s4] sm:$0x3] }
   0xc   :  { %838 = vmatprep.subr.mxu1 %v882_v2  ;;  %v645_v13 = vld [vmem:[%s1089_s5] sm:$0xff] }
   0xd   :  { %839 = vmatpush3.msra.mxu1 %v656_v47 }
   0xe   :  { %840 = vmatprep.subr.mxu1 %v882_v2 }
   0xf   :  { %841 = vmatpush3.msra.mxu1 %v655_v48 }
  0x10   :  { %842 = vmatprep.subr.mxu1 %v882_v2 }
  0x11   :  { %843 = vmatpush3.msra.mxu1 %v654_v49 }
  0x12   :  { %844 = vmatprep.subr.mxu1 %v882_v2 }
  0x13   :  { %845 = vmatpush3.msra.mxu1 %v653_v50 }
  0x14   :  { %846 = vmatprep.subr.mxu1 %v882_v2 }
  0x15   :  { %847 = vmatpush3.msra.mxu1 %v652_v51 }
  0x16   :  { %848 = vmatprep.subr.mxu1 %v882_v2 }
  0x17   :  { %849 = vmatpush3.msra.mxu1 %v651_v52 }
  0x18   :  { %850 = vmatprep.subr.mxu1 %v882_v2 }
  0x19   :  { %851 = vmatpush3.msra.mxu1 %v650_v53 }
  0x1a   :  { %852 = vmatprep.subr.mxu1 %v882_v2 }
  0x1b   :  { %853 = vmatpush3.msra.mxu1 %v649_v54 }
  0x1c   :  { %854 = vmatprep.subr.mxu1 %v882_v2 }
  0x1d   :  { %855 = vmatpush3.msra.mxu1 %v648_v55 }
  0x1e   :  { %856 = vmatprep.subr.mxu1 %v882_v2 }
  0x1f   :  { %857 = vmatpush3.msra.mxu1 %v647_v56 }
  0x20   :  { %858 = vmatprep.subr.mxu1 %v882_v2 }
  0x21   :  { %859 = vmatpush3.msra.mxu1 %v646_v57 }
  0x22   :  { %860 = vmatprep.subr.mxu1 %v882_v2 }
  0x23   :  { %861 = vmatpush3.msra.mxu1 %v645_v13 }
  0x7d   :  { %v29_v4 = vpop.permute.xlu0 %28 }
  0x7e   :  { %v31_v7 = vmul.f32 %v29_v4, %v25_v5 }
  0x82   :  { %v34_v8 = vpop.permute.xlu0 %33 }
  0x83   :  { %v36_v9 = vadd.f32 %v34_v8, %v31_v7 }
  0x85   :  { %52 = vrot.lane.b32.xlu1 %v36_v9, %s886_s27  ;;  %794 = vmatpush3.msk.msra.mxu0 %vm66_vm1, %v36_v9 }
  0x86   :  { %796 = vmatmul.mubr.msk.f32.vlgmr.msra.gmra.mxu0 %vm62_vm2, %v60_v10  ;;  %798 = vmatprep.subr.mxu0 %v882_v2 }
  0x87   :  { %800 = vmatprep.mubr.msk.f32.mxu0 %vm884_vm0, %v882_v2 }
  0x89   :  { %56 = vrot.lane.b32.xlu1 %v36_v9, %s887_s0 }
  0x8d   :  { %294 = vperm.xlu1 %876, %v928_v1  }
  0x91   :  { %878 = vset.pattern.permute.xlu1 %v888_v31 }
  0xf7   :  { %v53_v15 = vpop.permute.xlu1 %52 }
  0xf8   :  { %v54_v17 = vsel %vm952_vm3, 0.0, %v53_v15 }
  0xf9   :  { %799 = vmatpush3.msk.msra.mxu0 %vm66_vm1, %v54_v17 }
  0xfa   :  { %801 = vmatmul.mubr.msk.f32.vlgmr.msra.gmra.mxu0 %vm62_vm2, %v59_v16  ;;  %803 = vmatprep.subr.mxu0 %v882_v2 }
  0xfb   :  { %v57_v19 = vpop.permute.xlu1 %56  ;;  %805 = vmatprep.mubr.msk.f32.mxu0 %vm884_vm0, %v882_v2 }
  0xfc   :  { %v58_v21 = vsel %vm962_vm4, 0.0, %v57_v19 }
  0xfd   :  { %804 = vmatpush3.msk.msra.mxu0 %vm66_vm1, %v58_v21 }
  0xfe   :  { %806 = vmatmul.mubr.msk.f32.vlgmr.msra.gmra.mxu0 %vm62_vm2, %v61_v20 }
  0xff   :  { %810 = vmatprep.mubr.msk.f32.mxu0 %vm311_vm5, %v307_v24 }
 0x108   :  { %v295_v29 = vpop.permute.xlu1 %294 }
 0x146   :  { %v136_v22 = vpop.f32.mrf.mxu0 }
 0x148   :  { %v797_v23 = vpop.f32.mrf.mxu0 }
 0x1ba   :  { %v212_v25 = vpop.f32.mrf.mxu0 }
 0x1bb   :  { %v213_v27 = vadd.f32 %v212_v25, %v136_v22 }
 0x1bc   :  { %v802_v26 = vpop.f32.mrf.mxu0 }
 0x1be   :  { %v288_v28 = vpop.f32.mrf.mxu0 }
 0x1bf   :  { %v292_v30 = vadd.f32 %v288_v28, %v213_v27 }
 0x1c0   :  { %v807_v32 = vpop.f32.mrf.mxu0 }
 0x1c1   :  { %v297_v33 = vadd.f32 %v295_v29, %v292_v30 }
 0x1c3   :  { %v298_v34 = vmax.f32 %v297_v33, 0.0 }
 0x1c5   :  { %302 = vrot.lane.b32.xlu1 %v298_v34, %s887_s0  ;;  %299 = vrot.lane.b32.xlu0 %v298_v34, %s886_s27 }
 0x1c6   :  { %808 = vmatprep.subr.mxu0 %v298_v34 }
 0x1c7   :  { %809 = vmatpush3.msra.mxu0 %v298_v34 }
 0x1c8   :  { %811 = vmatmul.mubr.msk.f32.vlgmr.msra.gmra.mxu0 %vm311_vm5, %v308_v35 }
 0x1c9   :  { %815 = vmatprep.mubr.msk.f32.mxu0 %vm311_vm5, %v305_v36  ;;  %563 = vperm.xlu0 %877, %v24_v37  }
 0x1ca   :  { %558 = vperm.xlu1 %878, %v928_v1  }
 0x1cd   :  { %880 = vset.pattern.permute.xlu0 %v889_v14 }
 0x1ce   :  { %879 = vset.pattern.permute.xlu1 %v889_v14 }
 0x1cf   :  { %662 = vperm.xlu1 %879, %v928_v1  }
 0x237   :  { %v300_v38 = vpop.permute.xlu0 %299  ;;  %v303_v41 = vpop.permute.xlu1 %302 }
 0x238   :  { %813 = vmatprep.subr.msk.mxu0 %vm749_vm6, %v300_v38 }
 0x239   :  { %814 = vmatpush3.msk.msra.mxu0 %vm749_vm6, %v300_v38 }
 0x23a   :  { %816 = vmatmul.mubr.msk.f32.vlgmr.msra.gmra.mxu0 %vm311_vm5, %v306_v39  ;;  %818 = vmatprep.subr.msk.mxu0 %vm753_vm7, %v303_v41 }
 0x23b   :  { %819 = vmatpush3.msk.msra.mxu0 %vm753_vm7, %v303_v41  ;;  %820 = vmatprep.mubr.msk.f32.mxu0 %vm311_vm5, %v309_v40 }
 0x23c   :  { %823 = vmatprep.subr.mxu0 %v882_v2 }
 0x23e   :  { %821 = vmatmul.mubr.msk.f32.vlgmr.msra.gmra.mxu0 %vm311_vm5, %v310_v42 }
 0x23f   :  { %827 = vmatprep.mubr.msk.f32.mxu0 %vm884_vm0, %v882_v2 }
 0x244   :  { %v564_v0 = vpop.permute.xlu0 %563 }
 0x245   :  { %v559_v6 = vpop.permute.xlu1 %558 }
 0x24a   :  { %v663_v17 = vpop.permute.xlu1 %662 }
 0x288   :  { %v812_v58 = vpop.f32.mrf.mxu0 }
 0x28a   :  { %v384_v59 = vpop.f32.mrf.mxu0 }
 0x2fa   :  { %v817_v60 = vpop.f32.mrf.mxu0 }
 0x2fb   :  { %v471_v62 = vadd.f32 %v817_v60, %v812_v58 }
 0x2fc   :  { %v465_v61 = vpop.f32.mrf.mxu0 }
 0x2fd   :  { %v466_v3 = vadd.f32 %v465_v61, %v384_v59 }
 0x2fe   :  { %v822_v63 = vpop.f32.mrf.mxu0 }
 0x2ff   :  { %v556_v4 = vadd.f32 %v822_v63, %v471_v62 }
 0x300   :  { %v546_v5 = vpop.f32.mrf.mxu0 }
 0x301   :  { %v567_v7 = vadd.f32 %v564_v0, %v556_v4  ;;  %v555_v8 = vadd.f32 %v546_v5, %v466_v3 }
 0x303   :  { %v569_v9 = vmax.f32 %v567_v7, 0.0  ;;  %v566_v10 = vadd.f32 %v559_v6, %v555_v8 }
 0x305   :  { %v568_v11 = vmax.f32 %v566_v10, 0.0  ;;  %824 = vmatpush3.msra.mxu0 %v569_v9 }
 0x306   :  { %825 = vmatprep.subr.mxu0 %v882_v2 }
 0x307   :  { %826 = vmatpush3.msra.mxu0 %v568_v11 }
 0x308   :  { %828 = vmatmul.mubr.msk.f32.vlgmr.msra.gmra.mxu0 %vm571_vm8, %v570_v12 }
 0x3c8   :  { %v641_v15 = vpop.f32.mrf.mxu0 }
 0x3c9   :  { %863 = vmatmul.mubr.f32.vlgmr.msra.gmra.mxu1 %v641_v15 }
 0x3ca   :  { %v829_v16 = vpop.f32.mrf.mxu0 }
 0x489   :  { %v731_v18 = vpop.f32.mrf.mxu1 }
 0x48a   :  { %v732_v19 = vadd.f32 %v731_v18, %v663_v17 }
 0x48b   :  { %v864_v2 = vpop.f32.mrf.mxu1 }
 0x48c   :  { %736 = vst.msk [vmem:[%s1091_s6] sm:$0x3] %vm735_vm9, %v732_v19 }

</bundles_post_ra>
